<compile_context>
chip_gen: v7x
topology: tpu7x:2x2x1
jax: 0.10.0
libtpu: 0.0.40
codegen_flags: <defaults>
</compile_context>

<pallas_src>
import functools

import jax
import jax.numpy as jnp
from jax.experimental import pallas as pl
from jax.experimental.pallas import tpu as pltpu

LEAKY_SLOPE = 0.01   # nn.LeakyReLU() default negative_slope
BN_EPS = 1e-5        # nn.BatchNorm2d default eps

_NCORES = 2                              # leading "parallel" split for v7x pass 1
_TM_CANDIDATES = (2048, 1024, 512, 256, 128)
_VMEM_TILE_BUDGET = 20 * 1024 * 1024     # per-tile working-set budget (bytes)
_VMEM_LIMIT = 32 * 1024 * 1024           # explicit scoped-VMEM limit (raises v5e's 16 MiB)


def _cdiv(a, b):
    return (a + b - 1) // b


def _round_up(x, m):
    return _cdiv(x, m) * m


def _choose_tm(m, ck2, oc_pad, max_tm=None):
    """Pick the M-tile (lane) size: biggest tile with small padding waste that
    fits the VMEM budget (double-buffered bf16 patches tile + f32 output tile)."""
    def tile_bytes(t):
        return 2 * (2 * ck2 * t) + 2 * (4 * oc_pad * t)

    cands = [t for t in _TM_CANDIDATES
             if (max_tm is None or t <= max_tm) and tile_bytes(t) <= _VMEM_TILE_BUDGET]
    if not cands:
        cands = [_TM_CANDIDATES[-1]]

    def waste(t):
        return _cdiv(m, t) * t - m

    for t in cands:                       # descending: prefer large tiles ...
        if 8 * waste(t) <= max(m, t):     # ... whose padding waste is <= ~12.5%
            return t
    return min(cands, key=waste)          # else minimize padded work (e.g. M=1536 -> 512)


# ----------------------------------------------------------------------------
# Fused kernel (small / moderate M): grid = (2 phases, MT tiles).
#   phase 0: accumulate per-channel sum / sum-of-squares of the conv output.
#   phase 1: derive BN scale/shift once, re-run the cheap matmul, apply
#            fused BN FMA + LeakyReLU, store lane-dense (OC_PAD, TM) tiles.
# ----------------------------------------------------------------------------
def _fused_kernel(p_ref, w_ref, gamma_ref, beta_ref, o_ref,
                  sum_ref, sq_ref, scale_ref, shift_ref, *, inv_m):
    phase = pl.program_id(0)
    i = pl.program_id(1)

    # Conv as (OC_PAD, CK2) x (CK2, TM) matmul; bf16 operands, f32 accumulation.
    y = jnp.dot(w_ref[...], p_ref[...], preferred_element_type=jnp.float32)

    @pl.when((phase == 0) & (i == 0))
    def _():
        sum_ref[...] = jnp.zeros_like(sum_ref)
        sq_ref[...] = jnp.zeros_like(sq_ref)

    @pl.when(phase == 0)
    def _():
        # Zero-padded M columns / OC rows contribute exactly zero (no conv bias).
        sum_ref[...] += jnp.sum(y, axis=1, keepdims=True)
        sq_ref[...] += jnp.sum(y * y, axis=1, keepdims=True)

    @pl.when((phase == 1) & (i == 0))
    def _():
        mean = sum_ref[...] * inv_m
        var = sq_ref[...] * inv_m - mean * mean
        scale = gamma_ref[...] * jax.lax.rsqrt(var + BN_EPS)
        scale_ref[...] = scale
        shift_ref[...] = beta_ref[...] - mean * scale

    @pl.when(phase == 1)
    def _():
        z = y * scale_ref[...] + shift_ref[...]          # fused BN: one FMA / element
        o_ref[...] = jnp.where(z > 0, z, LEAKY_SLOPE * z)


# ----------------------------------------------------------------------------
# Split path (large M).
# ----------------------------------------------------------------------------
def _stats_kernel(p_ref, w_ref, sum_out_ref, sq_out_ref, sum_sc, sq_sc):
    """Pass 1: per-core partial per-channel sum / sumsq, written once per core row."""
    i = pl.program_id(1)

    @pl.when(i == 0)
    def _():
        sum_sc[...] = jnp.zeros_like(sum_sc)
        sq_sc[...] = jnp.zeros_like(sq_sc)

    y = jnp.dot(w_ref[...], p_ref[...], preferred_element_type=jnp.float32)
    sum_sc[...] += jnp.sum(y, axis=1, keepdims=True)
    sq_sc[...] += jnp.sum(y * y, axis=1, keepdims=True)

    @pl.when(i == pl.num_programs(1) - 1)
    def _():
        sum_out_ref[...] = sum_sc[...][None]
        sq_out_ref[...] = sq_sc[...][None]


def _norm_kernel(p_ref, w_ref, scale_ref, shift_ref, o_ref):
    """Pass 2: conv matmul + fused BN scale/shift + LeakyReLU (lane-dense store)."""
    y = jnp.dot(w_ref[...], p_ref[...], preferred_element_type=jnp.float32)
    z = y * scale_ref[...] + shift_ref[...]
    o_ref[...] = jnp.where(z > 0, z, LEAKY_SLOPE * z)


# ----------------------------------------------------------------------------
# Wrapper
# ----------------------------------------------------------------------------
def myconv_forward(x, weight, bias, gamma, beta, stride, *,
                   fuse_max_steps=16, max_tm=None):
    """x: (N, C, H, W) f32; weight: (OC, C, K, K); bias/gamma/beta: (OC,)."""
    N, C, H, W = x.shape
    OC, _, K, _ = weight.shape
    OH = (H - K) // stride + 1
    OW = (W - K) // stride + 1
    M = N * OH * OW
    CK2 = C * K * K

    # Conv bias is cancelled exactly by the BN batch-mean subtraction -> unused.
    del bias

    # --- im2col, transposed: patches (CK2, M); M is the lane axis ---
    if stride == K:
        # Non-overlapping patches: pure space-to-depth.
        xc = x[:, :, : OH * K, : OW * K]
        pt = xc.reshape(N, C, OH, K, OW, K).transpose(1, 3, 5, 0, 2, 4)
    else:
        cols = [x[:, :, i: i + stride * (OH - 1) + 1: stride,
                      j: j + stride * (OW - 1) + 1: stride]
                for i in range(K) for j in range(K)]
        pt = jnp.stack(cols, axis=0).transpose(2, 0, 1, 3, 4)   # (C, K*K, N, OH, OW)
    patches = pt.reshape(CK2, M).astype(jnp.bfloat16)

    OC_PAD = _round_up(OC, 8)                 # sublane padding only (not 128)
    TM = _choose_tm(M, CK2, OC_PAD, max_tm)
    MT = _cdiv(M, TM)
    fused = MT <= fuse_max_steps
    if not fused:
        MT = _round_up(MT, _NCORES)           # even split of tiles over 2 cores
    MP = MT * TM
    if MP != M:
        patches = jnp.pad(patches, ((0, 0), (0, MP - M)))

    w_mat = jnp.pad(weight.reshape(OC, CK2),
                    ((0, OC_PAD - OC), (0, 0))).astype(jnp.bfloat16)   # (OC_PAD, CK2)
    gamma_p = jnp.pad(gamma.astype(jnp.float32), (0, OC_PAD - OC)).reshape(OC_PAD, 1)
    beta_p = jnp.pad(beta.astype(jnp.float32), (0, OC_PAD - OC)).reshape(OC_PAD, 1)

    matmul_flops = 2 * MP * CK2 * OC_PAD

    if fused:
        out_t = pl.pallas_call(
            functools.partial(_fused_kernel, inv_m=1.0 / M),
            out_shape=jax.ShapeDtypeStruct((OC_PAD, MP), jnp.float32),
            grid=(2, MT),
            in_specs=[
                pl.BlockSpec((CK2, TM), lambda p, i: (0, i)),
                pl.BlockSpec((OC_PAD, CK2), lambda p, i: (0, 0)),
                pl.BlockSpec((OC_PAD, 1), lambda p, i: (0, 0)),
                pl.BlockSpec((OC_PAD, 1), lambda p, i: (0, 0)),
            ],
            # Phase 0 pins the output to block 0 (kept resident, no garbage
            # writeback); phase 1 writes every tile lane-dense.
            out_specs=pl.BlockSpec((OC_PAD, TM), lambda p, i: (0, i * p)),
            scratch_shapes=[pltpu.VMEM((OC_PAD, 1), jnp.float32)] * 4,
            compiler_params=pltpu.CompilerParams(
                dimension_semantics=("arbitrary", "arbitrary"),
                vmem_limit_bytes=_VMEM_LIMIT),
            cost_estimate=pl.CostEstimate(
                flops=2 * matmul_flops + 8 * MP * OC_PAD,
                transcendentals=OC_PAD,
                bytes_accessed=2 * (2 * MP * CK2) + 2 * OC_PAD * CK2
                               + 4 * MP * OC_PAD + 16 * OC_PAD),
        )(patches, w_mat, gamma_p, beta_p)
    else:
        mt_pc = MT // _NCORES
        sums, sqs = pl.pallas_call(
            _stats_kernel,
            out_shape=(jax.ShapeDtypeStruct((_NCORES, OC_PAD, 1), jnp.float32),
                       jax.ShapeDtypeStruct((_NCORES, OC_PAD, 1), jnp.float32)),
            grid=(_NCORES, mt_pc),
            in_specs=[
                pl.BlockSpec((CK2, TM), lambda c, i: (0, c * mt_pc + i)),
                pl.BlockSpec((OC_PAD, CK2), lambda c, i: (0, 0)),
            ],
            out_specs=(pl.BlockSpec((1, OC_PAD, 1), lambda c, i: (c, 0, 0)),
                       pl.BlockSpec((1, OC_PAD, 1), lambda c, i: (c, 0, 0))),
            scratch_shapes=[pltpu.VMEM((OC_PAD, 1), jnp.float32)] * 2,
            compiler_params=pltpu.CompilerParams(
                dimension_semantics=("parallel", "arbitrary"),
                vmem_limit_bytes=_VMEM_LIMIT),
            cost_estimate=pl.CostEstimate(
                flops=matmul_flops + 3 * MP * OC_PAD,
                transcendentals=0,
                bytes_accessed=2 * MP * CK2 + 2 * OC_PAD * CK2
                               + 8 * _NCORES * OC_PAD),
        )(patches, w_mat)

        # Fused BN scale/shift (batch mean, biased variance).  Padded columns /
        # channels contributed exactly zero, so dividing by the true M is exact.
        mean = jnp.sum(sums, axis=0) / M                        # (OC_PAD, 1)
        var = jnp.sum(sqs, axis=0) / M - mean * mean
        scale = gamma_p * jax.lax.rsqrt(var + BN_EPS)
        shift = beta_p - mean * scale

        out_t = pl.pallas_call(
            _norm_kernel,
            out_shape=jax.ShapeDtypeStruct((OC_PAD, MP), jnp.float32),
            grid=(MT,),
            in_specs=[
                pl.BlockSpec((CK2, TM), lambda i: (0, i)),
                pl.BlockSpec((OC_PAD, CK2), lambda i: (0, 0)),
                pl.BlockSpec((OC_PAD, 1), lambda i: (0, 0)),
                pl.BlockSpec((OC_PAD, 1), lambda i: (0, 0)),
            ],
            out_specs=pl.BlockSpec((OC_PAD, TM), lambda i: (0, i)),
            compiler_params=pltpu.CompilerParams(
                dimension_semantics=("parallel",),
                vmem_limit_bytes=_VMEM_LIMIT),
            cost_estimate=pl.CostEstimate(
                flops=matmul_flops + 4 * MP * OC_PAD,
                transcendentals=0,
                bytes_accessed=2 * MP * CK2 + 2 * OC_PAD * CK2
                               + 4 * MP * OC_PAD + 8 * OC_PAD),
        )(patches, w_mat, scale, shift)

    # Back to NCHW; with the transposed layout this is a cheap leading-axis permute.
    out = out_t[:OC, :M].reshape(OC, N, OH, OW).transpose(1, 0, 2, 3)
    return out


# ----------------------------------------------------------------------------
# Init / reference / self-check
# ----------------------------------------------------------------------------
def init_params(key, in_ch, out_ch, K):
    """Deterministic parameter init (PyTorch-style uniform bounds)."""
    kw, kb = jax.random.split(key)
    fan_in = in_ch * K * K
    bound = 1.0 / jnp.sqrt(fan_in)
    weight = jax.random.uniform(kw, (out_ch, in_ch, K, K), jnp.float32, -bound, bound)
    bias = jax.random.uniform(kb, (out_ch,), jnp.float32, -bound, bound)
    gamma = jnp.ones((out_ch,), jnp.float32)   # BatchNorm2d default weight
    beta = jnp.zeros((out_ch,), jnp.float32)   # BatchNorm2d default bias
    return weight, bias, gamma, beta


def _reference_forward(x, weight, bias, gamma, beta, stride):
    """Pure-JAX reference of the training-mode forward (full f32 precision)."""
    y = jax.lax.conv_general_dilated(
        x, weight, window_strides=(stride, stride), padding="VALID",
        dimension_numbers=("NCHW", "OIHW", "NCHW"),
        precision=jax.lax.Precision.HIGHEST)
    y = y + bias.reshape(1, -1, 1, 1)
    mean = jnp.mean(y, axis=(0, 2, 3), keepdims=True)
    var = jnp.mean((y - mean) ** 2, axis=(0, 2, 3), keepdims=True)
    y = (y - mean) * jax.lax.rsqrt(var + BN_EPS)
    y = y * gamma.reshape(1, -1, 1, 1) + beta.reshape(1, -1, 1, 1)
    return jnp.where(y > 0, y, LEAKY_SLOPE * y)


def _check(out, x, weight, bias, gamma, beta, stride):
    # Tight check: reference fed the SAME bf16-rounded conv operands (the only
    # approximation the kernel makes relative to the f32 module).
    xq = x.astype(jnp.bfloat16).astype(jnp.float32)
    wq = weight.astype(jnp.bfloat16).astype(jnp.float32)
    ref_q = _reference_forward(xq, wq, bias, gamma, beta, stride)
    assert jnp.allclose(out, ref_q, atol=2e-3, rtol=2e-3), float(
        jnp.max(jnp.abs(out - ref_q)))
    # Loose check against the full-f32 module (bounds bf16 input rounding).
    ref = _reference_forward(x, weight, bias, gamma, beta, stride)
    assert jnp.allclose(out, ref, atol=5e-2, rtol=5e-2), float(
        jnp.max(jnp.abs(out - ref)))


if __name__ == "__main__":
    key = jax.random.PRNGKey(0)
    k1, k2, k3, k4 = jax.random.split(key, 4)

    # --- shipped config: myconv(4, 8, in_dim=16, out_dim=8, stride=2) ---
    #     K = 16 - 2*(8-1) = 2; conv 2x2 stride 2: (2,4,16,16) -> (2,8,8,8)
    in_ch, out_ch = 4, 8
    in_dim, out_dim = 16, 8
    stride = 2
    K = int(in_dim - stride * (out_dim - 1))
    batch = 2

    x = jax.random.normal(k1, (batch, in_ch, in_dim, in_dim), jnp.float32)
    weight, bias, gamma, beta = init_params(k2, in_ch, out_ch, K)

    fwd = jax.jit(functools.partial(myconv_forward, stride=stride))
    out = fwd(x, weight, bias, gamma, beta)
    jax.block_until_ready(out)
    assert out.shape == (batch, out_ch, out_dim, out_dim), out.shape
    assert bool(jnp.all(jnp.isfinite(out)))
    _check(out, x, weight, bias, gamma, beta, stride)

    # --- second config: force the split (large-M) path to exercise it too ---
    #     myconv(4, 8, in_dim=32, out_dim=16, stride=2): (4,4,32,32) -> (4,8,16,16)
    in_dim2, out_dim2 = 32, 16
    K2 = int(in_dim2 - stride * (out_dim2 - 1))
    x2 = jax.random.normal(k3, (4, in_ch, in_dim2, in_dim2), jnp.float32)
    weight2, bias2, gamma2, beta2 = init_params(k4, in_ch, out_ch, K2)

    fwd2 = jax.jit(functools.partial(myconv_forward, stride=stride,
                                     fuse_max_steps=0, max_tm=128))
    out2 = fwd2(x2, weight2, bias2, gamma2, beta2)
    jax.block_until_ready(out2)
    assert out2.shape == (4, out_ch, out_dim2, out_dim2), out2.shape
    assert bool(jnp.all(jnp.isfinite(out2)))
    _check(out2, x2, weight2, bias2, gamma2, beta2, stride)

    print("KERNEL_OK")
</pallas_src>

<mosaic_0001>
module attributes {stable_mosaic.version = 11 : i64} {
  func.func @_fused_kernel(%arg0: i32, %arg1: i32, %arg2: memref<16x128xbf16, #tpu.memory_space<vmem>>, %arg3: memref<8x16xbf16, #tpu.memory_space<vmem>>, %arg4: memref<8x1xf32, #tpu.memory_space<vmem>>, %arg5: memref<8x1xf32, #tpu.memory_space<vmem>>, %arg6: memref<8x128xf32, #tpu.memory_space<vmem>>, %arg7: memref<8x1xf32, #tpu.memory_space<vmem>>, %arg8: memref<8x1xf32, #tpu.memory_space<vmem>>, %arg9: memref<8x1xf32, #tpu.memory_space<vmem>>, %arg10: memref<8x1xf32, #tpu.memory_space<vmem>>) attributes {dimension_semantics = [#tpu.dimension_semantics<arbitrary>, #tpu.dimension_semantics<arbitrary>], iteration_bounds = array<i64: 2, 1>, scalar_prefetch = 0 : i64, scratch_operands = 4 : i64, tpu.core_type = #tpu.core_type<tc>, window_params = [{transform_indices = @transform_0, window_bounds = array<i64: 16, 128>}, {pipeline_mode = #tpu.pipeline_mode<synchronous>, transform_indices = @transform_1, window_bounds = array<i64: 8, 16>}, {pipeline_mode = #tpu.pipeline_mode<synchronous>, transform_indices = @transform_2, window_bounds = array<i64: 8, 1>}, {pipeline_mode = #tpu.pipeline_mode<synchronous>, transform_indices = @transform_3, window_bounds = array<i64: 8, 1>}, {transform_indices = @transform_4, window_bounds = array<i64: 8, 128>}]} {
    %c0 = arith.constant 0 : index
    %c0_0 = arith.constant 0 : index
    %0 = vector.load %arg3[%c0, %c0_0] : memref<8x16xbf16, #tpu.memory_space<vmem>>, vector<8x16xbf16>
    %c0_1 = arith.constant 0 : index
    %c0_2 = arith.constant 0 : index
    %1 = vector.load %arg2[%c0_1, %c0_2] : memref<16x128xbf16, #tpu.memory_space<vmem>>, vector<16x128xbf16>
    %cst = arith.constant dense<0.000000e+00> : vector<8x128xf32>
    %2 = tpu.matmul %0, %1, %cst {dimension_numbers = #tpu.dot_dimension_numbers<[1], [0], [0], [1], [0, 0, 1, 1], [], []>} : vector<8x16xbf16>, vector<16x128xbf16>, vector<8x128xf32> -> vector<8x128xf32>
    %c0_i32 = arith.constant 0 : i32
    %3 = arith.cmpi eq, %arg0, %c0_i32 : i32
    %c0_i32_3 = arith.constant 0 : i32
    %4 = arith.cmpi eq, %arg1, %c0_i32_3 : i32
    %5 = arith.andi %3, %4 : i1
    %6 = arith.extui %5 : i1 to i32
    %c0_i32_4 = arith.constant 0 : i32
    %7 = arith.cmpi ne, %6, %c0_i32_4 : i32
    scf.if %7 {
      %cst_11 = arith.constant 0.000000e+00 : f32
      %19 = vector.broadcast %cst_11 : f32 to vector<8x1xf32>
      %c0_12 = arith.constant 0 : index
      %c0_13 = arith.constant 0 : index
      %20 = vector.load %arg7[%c0_12, %c0_13] : memref<8x1xf32, #tpu.memory_space<vmem>>, vector<8x1xf32>
      tpu.vector_store %arg7[%c0_12, %c0_13], %19 {strides = array<i32>} : memref<8x1xf32, #tpu.memory_space<vmem>>, vector<8x1xf32>,
      %cst_14 = arith.constant 0.000000e+00 : f32
      %21 = vector.broadcast %cst_14 : f32 to vector<8x1xf32>
      %c0_15 = arith.constant 0 : index
      %c0_16 = arith.constant 0 : index
      %22 = vector.load %arg8[%c0_15, %c0_16] : memref<8x1xf32, #tpu.memory_space<vmem>>, vector<8x1xf32>
      tpu.vector_store %arg8[%c0_15, %c0_16], %21 {strides = array<i32>} : memref<8x1xf32, #tpu.memory_space<vmem>>, vector<8x1xf32>,
    } else {
    }
    %c0_i32_5 = arith.constant 0 : i32
    %8 = arith.cmpi eq, %arg0, %c0_i32_5 : i32
    %9 = arith.extui %8 : i1 to i32
    %c0_i32_6 = arith.constant 0 : i32
    %10 = arith.cmpi ne, %9, %c0_i32_6 : i32
    scf.if %10 {
      %c0_11 = arith.constant 0 : index
      %c0_12 = arith.constant 0 : index
      %19 = vector.load %arg7[%c0_11, %c0_12] : memref<8x1xf32, #tpu.memory_space<vmem>>, vector<8x1xf32>
      %cst_13 = arith.constant dense<0.000000e+00> : vector<8xf32>
      %20 = vector.multi_reduction <add>, %2, %cst_13 [1] : vector<8x128xf32> to vector<8xf32>
      %21 = vector.shape_cast %20 : vector<8xf32> to vector<8x1xf32>
      %22 = arith.addf %19, %21 : vector<8x1xf32>
      %c0_14 = arith.constant 0 : index
      %c0_15 = arith.constant 0 : index
      %23 = vector.load %arg7[%c0_14, %c0_15] : memref<8x1xf32, #tpu.memory_space<vmem>>, vector<8x1xf32>
      tpu.vector_store %arg7[%c0_14, %c0_15], %22 {strides = array<i32>} : memref<8x1xf32, #tpu.memory_space<vmem>>, vector<8x1xf32>,
      %c0_16 = arith.constant 0 : index
      %c0_17 = arith.constant 0 : index
      %24 = vector.load %arg8[%c0_16, %c0_17] : memref<8x1xf32, #tpu.memory_space<vmem>>, vector<8x1xf32>
      %25 = arith.mulf %2, %2 : vector<8x128xf32>
      %cst_18 = arith.constant dense<0.000000e+00> : vector<8xf32>
      %26 = vector.multi_reduction <add>, %25, %cst_18 [1] : vector<8x128xf32> to vector<8xf32>
      %27 = vector.shape_cast %26 : vector<8xf32> to vector<8x1xf32>
      %28 = arith.addf %24, %27 : vector<8x1xf32>
      %c0_19 = arith.constant 0 : index
      %c0_20 = arith.constant 0 : index
      %29 = vector.load %arg8[%c0_19, %c0_20] : memref<8x1xf32, #tpu.memory_space<vmem>>, vector<8x1xf32>
      tpu.vector_store %arg8[%c0_19, %c0_20], %28 {strides = array<i32>} : memref<8x1xf32, #tpu.memory_space<vmem>>, vector<8x1xf32>,
    } else {
    }
    %c1_i32 = arith.constant 1 : i32
    %11 = arith.cmpi eq, %arg0, %c1_i32 : i32
    %c0_i32_7 = arith.constant 0 : i32
    %12 = arith.cmpi eq, %arg1, %c0_i32_7 : i32
    %13 = arith.andi %11, %12 : i1
    %14 = arith.extui %13 : i1 to i32
    %c0_i32_8 = arith.constant 0 : i32
    %15 = arith.cmpi ne, %14, %c0_i32_8 : i32
    scf.if %15 {
      %c0_11 = arith.constant 0 : index
      %c0_12 = arith.constant 0 : index
      %19 = vector.load %arg7[%c0_11, %c0_12] : memref<8x1xf32, #tpu.memory_space<vmem>>, vector<8x1xf32>
      %cst_13 = arith.constant 7.812500e-03 : f32
      %20 = vector.broadcast %cst_13 : f32 to vector<8x1xf32>
      %21 = arith.mulf %19, %20 : vector<8x1xf32>
      %c0_14 = arith.constant 0 : index
      %c0_15 = arith.constant 0 : index
      %22 = vector.load %arg8[%c0_14, %c0_15] : memref<8x1xf32, #tpu.memory_space<vmem>>, vector<8x1xf32>
      %cst_16 = arith.constant 7.812500e-03 : f32
      %23 = vector.broadcast %cst_16 : f32 to vector<8x1xf32>
      %24 = arith.mulf %22, %23 : vector<8x1xf32>
      %25 = arith.mulf %21, %21 : vector<8x1xf32>
      %26 = arith.subf %24, %25 : vector<8x1xf32>
      %c0_17 = arith.constant 0 : index
      %c0_18 = arith.constant 0 : index
      %27 = vector.load %arg4[%c0_17, %c0_18] : memref<8x1xf32, #tpu.memory_space<vmem>>, vector<8x1xf32>
      %cst_19 = arith.constant 9.99999974E-6 : f32
      %28 = vector.broadcast %cst_19 : f32 to vector<8x1xf32>
      %29 = arith.addf %26, %28 : vector<8x1xf32>
      %30 = math.rsqrt %29 : vector<8x1xf32>
      %31 = arith.mulf %27, %30 : vector<8x1xf32>
      %c0_20 = arith.constant 0 : index
      %c0_21 = arith.constant 0 : index
      %32 = vector.load %arg9[%c0_20, %c0_21] : memref<8x1xf32, #tpu.memory_space<vmem>>, vector<8x1xf32>
      tpu.vector_store %arg9[%c0_20, %c0_21], %31 {strides = array<i32>} : memref<8x1xf32, #tpu.memory_space<vmem>>, vector<8x1xf32>,
      %c0_22 = arith.constant 0 : index
      %c0_23 = arith.constant 0 : index
      %33 = vector.load %arg5[%c0_22, %c0_23] : memref<8x1xf32, #tpu.memory_space<vmem>>, vector<8x1xf32>
      %34 = arith.mulf %21, %31 : vector<8x1xf32>
      %35 = arith.subf %33, %34 : vector<8x1xf32>
      %c0_24 = arith.constant 0 : index
      %c0_25 = arith.constant 0 : index
      %36 = vector.load %arg10[%c0_24, %c0_25] : memref<8x1xf32, #tpu.memory_space<vmem>>, vector<8x1xf32>
      tpu.vector_store %arg10[%c0_24, %c0_25], %35 {strides = array<i32>} : memref<8x1xf32, #tpu.memory_space<vmem>>, vector<8x1xf32>,
    } else {
    }
    %c1_i32_9 = arith.constant 1 : i32
    %16 = arith.cmpi eq, %arg0, %c1_i32_9 : i32
    %17 = arith.extui %16 : i1 to i32
    %c0_i32_10 = arith.constant 0 : i32
    %18 = arith.cmpi ne, %17, %c0_i32_10 : i32
    scf.if %18 {
      %c0_11 = arith.constant 0 : index
      %c0_12 = arith.constant 0 : index
      %19 = vector.load %arg9[%c0_11, %c0_12] : memref<8x1xf32, #tpu.memory_space<vmem>>, vector<8x1xf32>
      %20 = vector.broadcast %19 : vector<8x1xf32> to vector<8x128xf32>
      %21 = arith.mulf %2, %20 : vector<8x128xf32>
      %c0_13 = arith.constant 0 : index
      %c0_14 = arith.constant 0 : index
      %22 = vector.load %arg10[%c0_13, %c0_14] : memref<8x1xf32, #tpu.memory_space<vmem>>, vector<8x1xf32>
      %23 = vector.broadcast %22 : vector<8x1xf32> to vector<8x128xf32>
      %24 = arith.addf %21, %23 : vector<8x128xf32>
      %cst_15 = arith.constant 0.000000e+00 : f32
      %25 = vector.broadcast %cst_15 : f32 to vector<8x128xf32>
      %26 = arith.cmpf ogt, %24, %25 : vector<8x128xf32>
      %cst_16 = arith.constant 0.00999999977 : f32
      %27 = vector.broadcast %cst_16 : f32 to vector<8x128xf32>
      %28 = arith.mulf %27, %24 : vector<8x128xf32>
      %29 = arith.select %26, %24, %28 : vector<8x128xi1>, vector<8x128xf32>
      %c0_17 = arith.constant 0 : index
      %c0_18 = arith.constant 0 : index
      %30 = vector.load %arg6[%c0_17, %c0_18] : memref<8x128xf32, #tpu.memory_space<vmem>>, vector<8x128xf32>
      tpu.vector_store %arg6[%c0_17, %c0_18], %29 {strides = array<i32>} : memref<8x128xf32, #tpu.memory_space<vmem>>, vector<8x128xf32>,
    } else {
    }
    return
  }
  func.func @transform_0(%arg0: i32, %arg1: i32) -> (i32, i32) {
    %c0_i32 = arith.constant 0 : i32
    %c0_i32_0 = arith.constant 0 : i32
    return %c0_i32, %arg1 : i32, i32
  }
  func.func @transform_1(%arg0: i32, %arg1: i32) -> (i32, i32) {
    %c0_i32 = arith.constant 0 : i32
    %c0_i32_0 = arith.constant 0 : i32
    %c0_i32_1 = arith.constant 0 : i32
    return %c0_i32, %c0_i32_0 : i32, i32
  }
  func.func @transform_2(%arg0: i32, %arg1: i32) -> (i32, i32) {
    %c0_i32 = arith.constant 0 : i32
    %c0_i32_0 = arith.constant 0 : i32
    %c0_i32_1 = arith.constant 0 : i32
    return %c0_i32, %c0_i32_0 : i32, i32
  }
  func.func @transform_3(%arg0: i32, %arg1: i32) -> (i32, i32) {
    %c0_i32 = arith.constant 0 : i32
    %c0_i32_0 = arith.constant 0 : i32
    %c0_i32_1 = arith.constant 0 : i32
    return %c0_i32, %c0_i32_0 : i32, i32
  }
  func.func @transform_4(%arg0: i32, %arg1: i32) -> (i32, i32) {
    %0 = arith.muli %arg1, %arg0 : i32
    %c0_i32 = arith.constant 0 : i32
    %c0_i32_0 = arith.constant 0 : i32
    return %c0_i32, %0 : i32, i32
  }
}

</mosaic_0001>

<bundles_post_ra>
// kernel: myconv_forward.1
= control target key start
LH: loop header
LB: loop body
LE: loop exit
PB: predicated region body
PF: predicated region fallthrough
CT: control target
= control target key end

     0   :  { %s508_s15 = smov 0   ;;  %s510_s16 = smov 0   ;;  %s556_s0 = inlined_call_operand.vmem [shape: bf16[16,128], index: 0, kind: input, shape index: {}]   ;;  %s557_s1 = inlined_call_operand.vmem [shape: bf16[8,16], index: 1, kind: input, shape index: {}]   ;;  %s558_s2 = inlined_call_operand.vmem [shape: f32[8,1], index: 2, kind: input, shape index: {}]   ;;  %s559_s3 = inlined_call_operand.vmem [shape: f32[8,1], index: 3, kind: input, shape index: {}]   ;;  %s560_s4 = inlined_call_operand.vmem [shape: f32[8,128], index: 4, kind: output, shape index: {}]  }
   0x1   :  { %s512_s17 = smov 0  }
   0x2 LB: > { %s26_s18 = sadd.s32 1, %s473_s16  ;;  %p402_p0 = scmp.ge.s32.totalorder %s477_s17, 1  ;;  %s477_s17 = sphi %s512_s17, %s14_s17   ;;  %s473_s16 = sphi %s510_s16, %s562_s16   ;;  %s469_s15 = sphi %s508_s15, %s561_s15  }
   0x3   : > { %p28_p1 = scmp.ge.s32.totalorder %s26_s18, 2  ;;  %p175_p2 = scmp.lt.s32.totalorder %s477_s17, 3 }
   0x5   : > { %s564_s18 = smov (%p28_p1, %s26_s18), 0  ;;  %p176_p3 = pnand %p402_p0, %p175_p2 }
   0x6   : > { %v451_v0 = vld [vmem:[%s556_s0] sm:$0xff] (!%p176_p3)   ;;  %v479_v1 = vmov (!%p176_p3), 0.0   ;;  %vm480_vm0 = vmmov (!%p176_p3), 0   ;;  %vm220_vm1 = vcmask (!%p176_p3), 130048   ;;  %p264_p4 = scmp.eq.s32.totalorder (!%p176_p3), %s469_s15, 0 }
   0x7   : > { %179 = sbr.rel (%p176_p3) target bundleno = 548 (0x224), region = 36  ;;  %417 = vmatprep.subr.bf16.mxu0 (!%p176_p3), %v479_v1  ;;  %419 = vmatprep.mubr.msk.bf16.mxu0 (!%p176_p3), %vm480_vm0, %v479_v1  ;;  %v211_v2 = vld [vmem:[%s557_s1] sm:$0xf] (!%p176_p3) }
   0x8   : > { %418 = vmatpush3.bf16.msra.mxu0 (!%p176_p3), %v451_v0 }
   0xb   : > { %420 = vmatmul.mubr.msk.bf16.vlgmr.msra.gmra.mrb[0].mxu0 (!%p176_p3), %vm220_vm1, %v211_v2 }
   0xe   : > { %vm270_vm2 = vcmask (%p264_p4), 7168   ;;  %v481_v7 = vmov (%p264_p4), 0.0  }
   0xf   : > { %271 = vst.msk [vmem:[#allocation2] sm:$0xff] (%p264_p4), %vm270_vm2, %v481_v7  ;;  %272 = vst.msk [vmem:[#allocation3] sm:$0xff] (%p264_p4), %vm270_vm2, %v481_v7 }
  0xdb   : > { %269 = sbr.rel (!%p264_p4) target bundleno = 226 (0xe2), region = 40 }
  0xde   : > { %v258_v3 = vpop.f32.mrb[0].mxu0 }
  0xdf   : > { %v421_v4 = vpop.f32.mrb[1].mxu0 }
  0xe0   : > { %v261_v5 = vpop.f32.mrb[2].mxu0 }
  0xe1   : > { %v422_v6 = vpop.f32.mrb[3].mxu0 }
  0xe2 PF: > { %p406_p5 = scmp.ne.s32.totalorder %s469_s15, 0 }
  0xe3   : > { %277 = vadd.xlane.f32.xlu0 (!%p406_p5), %v258_v3  ;;  %v283_v8 = vmul.f32 (!%p406_p5), %v258_v3, %v258_v3  ;;  %v276_v9 = vld [vmem:[#allocation2] sm:$0xff] (!%p406_p5)  ;;  %vm280_vm3 = vcmask (!%p406_p5), 7168   ;;  %v282_v12 = vld [vmem:[#allocation3] sm:$0xff] (!%p406_p5) }
  0xe4   : > { %275 = sbr.rel (%p406_p5) target bundleno = 376 (0x178), region = 44 }
  0xe7   : > { %284 = vadd.xlane.f32.xlu0 (!%p406_p5), %v283_v8 }
 0x170   : > { %v278_v10 = vpop.xlane.xlu0 %277 }
 0x171   : > { %v279_v11 = vadd.f32 %v278_v10, %v276_v9 }
 0x173   : > { %281 = vst.msk [vmem:[#allocation2] sm:$0xff] %vm280_vm3, %v279_v11 }
 0x174   : > { %v285_v13 = vpop.xlane.xlu0 %284 }
 0x175   : > { %v286_v14 = vadd.f32 %v285_v13, %v282_v12 }
 0x177   : > { %287 = vst.msk [vmem:[#allocation3] sm:$0xff] %vm280_vm3, %v286_v14 }
 0x178 PF: > { %p288_p6 = scmp.eq.s32.totalorder %s469_s15, 1 }
 0x179   : > { %v299_v22 = vld [vmem:[%s558_s2] sm:$0xff] (%p288_p6)  ;;  %vm303_vm4 = vcmask (%p288_p6), 7168  }
 0x17a   : > { %292 = sbr.rel (!%p288_p6) target bundleno = 407 (0x197), region = 48  ;;  %v293_v15 = vld [vmem:[#allocation2] sm:$0xff] (%p288_p6) }
 0x17b   : > { %v294_v17 = vmul.f32 (%p288_p6), 0.0078125, %v293_v15  ;;  %v305_v25 = vld [vmem:[%s559_s3] sm:$0xff] (%p288_p6) }
 0x17d   : > { %v297_v19 = vmul.f32 (%p288_p6), %v294_v17, %v294_v17 }
 0x17e   : > { %v295_v16 = vld [vmem:[#allocation3] sm:$0xff] (%p288_p6) }
 0x17f   : > { %v296_v18 = vmul.f32 (%p288_p6), 0.0078125, %v295_v16 }
 0x181   : > { %v298_v20 = vsub.f32 %v296_v18, %v297_v19 }
 0x183   : > { %v300_v21 = vadd.f32 1e-05, %v298_v20 }
 0x185   : > { %452 = vrsqrt.f32 %v300_v21 }
 0x18f   : > { %v453_v23 = vpop.eup %452 }
 0x190   : > { %v302_v24 = vmul.f32 %v453_v23, %v299_v22 }
 0x192   : > { %304 = vst.msk [vmem:[#allocation4] sm:$0xff] %vm303_vm4, %v302_v24  ;;  %v306_v26 = vmul.f32 %v302_v24, %v294_v17 }
 0x194   : > { %v307_v27 = vsub.f32 %v305_v25, %v306_v26 }
 0x196   : > { %308 = vst.msk [vmem:[#allocation5] sm:$0xff] %vm303_vm4, %v307_v27 }
 0x197 PF: > { %p408_p7 = scmp.ne.s32.totalorder %s469_s15, 1 }
 0x198   : > { %v482_v29 = vmov (!%p408_p7), 0  }
 0x199   : > { %311 = sbr.rel (%p408_p7) target bundleno = 548 (0x224), region = 52  ;;  %v312_v28 = vld [vmem:[#allocation4] sm:$0xff] (!%p408_p7)  ;;  %454 = vset.pattern.permute.xlu0 (!%p408_p7), %v482_v29 }
 0x19a   : > { %315 = vperm.xlu0 (!%p408_p7), %454, %v312_v28  }
 0x19d   : > { %v319_v30 = vld [vmem:[#allocation5] sm:$0xff] (!%p408_p7) }
 0x19e   : > { %322 = vperm.xlu0 (!%p408_p7), %454, %v319_v30  }
 0x219   : > { %v316_v31 = vpop.permute.xlu0 %315 }
 0x21a   : > { %v318_v32 = vmul.f32 %v316_v31, %v258_v3 }
 0x21d   : > { %v323_v33 = vpop.permute.xlu0 %322 }
 0x21e   : > { %v325_v34 = vadd.f32 %v323_v33, %v318_v32 }
 0x220   : > { %vm326_vm5 = vcmp.gt.f32.partialorder %v325_v34, 0.0  ;;  %v327_v35 = vmul.f32 0.01, %v325_v34 }
 0x222   : > { %v328_v36 = vsel %vm326_vm5, %v325_v34, %v327_v35 }
 0x223   : > { %329 = vst [vmem:[%s560_s4] sm:$0xff] %v328_v36 }
 0x224 PF: > { %s14_s17 = sadd.s32 1, %s477_s17   ;;  %s561_s15 = smov %s473_s16 }
 0x225   : > { %p11_p8 = scmp.ge.s32.totalorder %s14_s17, 4   ;;  %s562_s16 = smov %s564_s18 }
 0x227   :  { %13 = sbr.rel (!%p11_p8) target bundleno = 2 (0x2), region = 82 }

</bundles_post_ra>
